<compile_context>
chip_gen: v5e
topology: v5e:2x2
jax: 0.10.0
libtpu: 0.0.40
codegen_flags: <defaults>
</compile_context>

<pallas_src>
import functools

import jax
import jax.numpy as jnp
from jax.experimental import pallas as pl
from jax.experimental.pallas import tpu as pltpu


_VMEM_LIMIT_BYTES = 48 * 1024 * 1024    # scoped VMEM limit (<= v7x 64 MiB/TC)
_SLAB_WS_BUDGET = 36 * 1024 * 1024      # slab schedule working-set target
_SLAB_ACC_BUDGET = 24 * 1024 * 1024     # max bytes for the (n_t, tm, tm) scratch
_SLAB_MAX_ROW_BLOCKS = 8                # caps static unroll of the pair loop


def _round_up(x, m):
    return (x + m - 1) // m * m


def _sublane(dtype):
    """Dtype-aware sublane packing: f32 -> 8, bf16 -> 16, int8/fp8 -> 32."""
    return {4: 8, 2: 16, 1: 32}.get(jnp.dtype(dtype).itemsize, 8)


def _pick_tk(N, cap):
    """Largest lane-aligned K tile <= cap; prefer no N padding (full dim or an
    exact divisor), then minimal padding, then the largest tile."""
    cap = max(128, (cap // 128) * 128)
    if N <= cap:
        return N                      # full-dim block: legal, no padding copy
    best = None
    for c in range(cap, 127, -128):
        pad = _round_up(N, c) - N
        key = (pad, -c)
        if best is None or key < best[0]:
            best = (key, c)
    return best[1]


def _pick_tm_traffic(M, cap, sublane):
    """Row tile minimizing total HBM reads ~ (n_mb + 1) * M_pad (the kernel is
    memory-bound), tie-broken on less padding then on larger tiles."""
    cands = set(range(sublane, cap + 1, sublane))
    full = _round_up(M, sublane)
    if full <= cap:
        cands.add(full)
    best = None
    for t in cands:
        n_mb = -(-M // t)
        m_pad = n_mb * t
        key = ((n_mb + 1) * m_pad, m_pad - M, -t)
        if best is None or key < best[0]:
            best = (key, t)
    return best[1]


# ----------------------------------------------------------------------------
# Kernel 1: K-outer column-slab schedule (W read from HBM exactly once).
# ----------------------------------------------------------------------------
def _ortho_slab_kernel(w_ref, out_ref, acc_ref, *, n_mb, tm, n_kb):
    k = pl.program_id(0)

    t = 0
    for i in range(n_mb):
        wi = w_ref[pl.ds(i * tm, tm), :]
        for j in range(i, n_mb):
            wj = wi if j == i else w_ref[pl.ds(j * tm, tm), :]
            # G_ij += W_i . W_j^T — contract the lane dim of both operands so no
            # transpose is materialized; native input dtype, f32 accumulation.
            g = jax.lax.dot_general(
                wi, wj,
                dimension_numbers=(((1,), (1,)), ((), ())),
                preferred_element_type=jnp.float32)
            if n_kb == 1:
                acc_ref[t] = g
            else:
                # Write-through on the first K step: no zero fill + RMW pass.
                @pl.when(k == 0)
                def _(g=g, t=t):
                    acc_ref[t] = g

                @pl.when(k != 0)
                def _(g=g, t=t):
                    acc_ref[t] = acc_ref[t] + g
            t += 1

    @pl.when(k == n_kb - 1)
    def _():
        total = jnp.float32(0.0)
        t = 0
        for i in range(n_mb):
            for j in range(i, n_mb):
                g = acc_ref[t]
                sq = jnp.sum(g * g)
                if i == j:
                    # Diagonal block: sum((G - I)^2) = sum(G^2) - 2 tr(G) + tm
                    row = jax.lax.broadcasted_iota(jnp.int32, g.shape, 0)
                    col = jax.lax.broadcasted_iota(jnp.int32, g.shape, 1)
                    tr = jnp.sum(jnp.where(row == col, g, 0.0))
                    total = total + (sq - 2.0 * tr + jnp.float32(tm))
                else:
                    # Off-diagonal (j > i) block counts for its mirror too.
                    total = total + 2.0 * sq
                t += 1
        out_ref[0] = total


# ----------------------------------------------------------------------------
# Kernel 2: block-pair fallback (Gram triangle does not fit VMEM).
# ----------------------------------------------------------------------------
def _ortho_pair_kernel(bi_ref, bj_ref, wl_ref, wr_ref, out_ref, acc_ref, *, tm):
    t = pl.program_id(0)
    k = pl.program_id(1)
    n_k = pl.num_programs(1)

    g = jax.lax.dot_general(
        wl_ref[...], wr_ref[...],
        dimension_numbers=(((1,), (1,)), ((), ())),
        preferred_element_type=jnp.float32)

    @pl.when(k == 0)
    def _():                 # write-through on first K step (skip zero-init)
        acc_ref[...] = g

    @pl.when(k != 0)
    def _():
        acc_ref[...] = acc_ref[...] + g

    @pl.when(k == n_k - 1)
    def _():
        gg = acc_ref[...]
        sq = jnp.sum(gg * gg)
        is_diag = bi_ref[t] == bj_ref[t]

        @pl.when(is_diag)    # trace only materialized for diagonal blocks
        def _():
            row = jax.lax.broadcasted_iota(jnp.int32, gg.shape, 0)
            col = jax.lax.broadcasted_iota(jnp.int32, gg.shape, 1)
            tr = jnp.sum(jnp.where(row == col, gg, 0.0))
            out_ref[...] = jnp.full(out_ref.shape,
                                    sq - 2.0 * tr + jnp.float32(tm),
                                    dtype=jnp.float32)

        @pl.when(jnp.logical_not(is_diag))
        def _():
            out_ref[...] = jnp.full(out_ref.shape, 2.0 * sq, dtype=jnp.float32)


# ----------------------------------------------------------------------------
# Wrapper
# ----------------------------------------------------------------------------
def ortho_reg(W, alpha=0.1, *, tm=None, tk=None, schedule="auto",
              cast_to_bf16=False):
    """alpha * ||W @ W^T - I||_F via traffic-optimized Pallas TPU kernels."""
    assert W.ndim == 2, "OrthoReg expects a 2-D weight matrix"
    if cast_to_bf16 and W.dtype == jnp.float32:
        # Optional: halve HBM traffic; MXU takes bf16 natively on v5e/v6e/v7x.
        W = W.astype(jnp.bfloat16)

    M, N = W.shape
    itemsize = jnp.dtype(W.dtype).itemsize
    sub = _sublane(W.dtype)

    tm_req = None if tm is None else min(_round_up(int(tm), sub),
                                         _round_up(M, sub))
    tk_req = None if tk is None else min(_round_up(int(tk), 128),
                                         _round_up(N, 128))

    def slab_plan():
        if tm_req is not None:
            tm_s = tm_req
        else:
            full = _round_up(M, sub)
            tm_s = full if full <= 512 else 256
        m_pad = _round_up(M, tm_s)
        n_mb = m_pad // tm_s
        if n_mb > _SLAB_MAX_ROW_BLOCKS:
            return None
        n_t = n_mb * (n_mb + 1) // 2
        acc_bytes = n_t * tm_s * tm_s * 4
        if acc_bytes > _SLAB_ACC_BUDGET:
            return None
        tk_cap = (_SLAB_WS_BUDGET - acc_bytes) // (2 * m_pad * itemsize)
        if tk_req is not None:
            tk_s = tk_req
        elif N <= tk_cap:
            tk_s = N                       # whole-N slab: 1 K step, no pad copy
        else:
            if tk_cap < 128:
                return None
            tk_s = _pick_tk(N, min(tk_cap, 2048))
        if acc_bytes + 2 * m_pad * tk_s * itemsize > _SLAB_WS_BUDGET:
            return None
        n_pad = _round_up(N, tk_s)
        return dict(tm=tm_s, tk=tk_s, m_pad=m_pad, n_pad=n_pad,
                    n_mb=n_mb, n_kb=n_pad // tk_s, n_t=n_t)

    def pair_plan():
        tm_p = tm_req if tm_req is not None else _pick_tm_traffic(M, 512, sub)
        tk_p = tk_req if tk_req is not None else _pick_tk(N, 1024)
        m_pad = _round_up(M, tm_p)
        n_pad = _round_up(N, tk_p)
        n_mb = m_pad // tm_p
        return dict(tm=tm_p, tk=tk_p, m_pad=m_pad, n_pad=n_pad,
                    n_mb=n_mb, n_kb=n_pad // tk_p,
                    n_t=n_mb * (n_mb + 1) // 2)

    plan, use_slab = None, False
    if schedule in ("auto", "slab"):
        plan = slab_plan()
        use_slab = plan is not None
    if plan is None:
        if schedule == "slab":
            raise ValueError("slab schedule does not fit the VMEM budget")
        plan = pair_plan()

    tm_, tk_ = plan["tm"], plan["tk"]
    m_pad, n_pad = plan["m_pad"], plan["n_pad"]
    n_mb, n_kb, n_t = plan["n_mb"], plan["n_kb"], plan["n_t"]

    if (m_pad, n_pad) != (M, N):
        Wp = jnp.zeros((m_pad, n_pad), dtype=W.dtype).at[:M, :N].set(W)
    else:
        Wp = W  # no materialized padding copy

    cparams = pltpu.CompilerParams(
        dimension_semantics=(("arbitrary",) if use_slab
                             else ("parallel", "arbitrary")),
        vmem_limit_bytes=_VMEM_LIMIT_BYTES,
    )

    if use_slab:
        kern = functools.partial(_ortho_slab_kernel,
                                 n_mb=n_mb, tm=tm_, n_kb=n_kb)
        out = pl.pallas_call(
            kern,
            out_shape=jax.ShapeDtypeStruct((1,), jnp.float32),
            grid_spec=pltpu.PrefetchScalarGridSpec(
                num_scalar_prefetch=0,
                grid=(n_kb,),
                in_specs=[pl.BlockSpec((m_pad, tk_), lambda k: (0, k))],
                out_specs=pl.BlockSpec(memory_space=pltpu.MemorySpace.SMEM),
                scratch_shapes=[pltpu.VMEM((n_t, tm_, tm_), jnp.float32)],
            ),
            compiler_params=cparams,
        )(Wp)
        total = out[0]
    else:
        pairs = [(i, j) for i in range(n_mb) for j in range(i, n_mb)]
        bi = jnp.asarray([p[0] for p in pairs], dtype=jnp.int32)
        bj = jnp.asarray([p[1] for p in pairs], dtype=jnp.int32)
        kern = functools.partial(_ortho_pair_kernel, tm=tm_)
        out = pl.pallas_call(
            kern,
            out_shape=jax.ShapeDtypeStruct((n_t, 8, 128), jnp.float32),
            grid_spec=pltpu.PrefetchScalarGridSpec(
                num_scalar_prefetch=2,
                grid=(n_t, n_kb),
                in_specs=[
                    pl.BlockSpec((tm_, tk_), lambda t, k, bi, bj: (bi[t], k)),
                    pl.BlockSpec((tm_, tk_), lambda t, k, bi, bj: (bj[t], k)),
                ],
                # Per-pair blocked output -> disjoint writes -> the pair axis
                # can be megacore-"parallel" on v7x (no effect on v5e/v6e).
                out_specs=pl.BlockSpec((1, 8, 128),
                                       lambda t, k, bi, bj: (t, 0, 0)),
                scratch_shapes=[pltpu.VMEM((tm_, tm_), jnp.float32)],
            ),
            compiler_params=cparams,
        )(bi, bj, Wp, Wp)
        total = jnp.sum(out[:, 0, 0], dtype=jnp.float32)

    # Each zero-padded row contributes exactly +1 through the identity term of
    # its diagonal block; remove it, then sqrt + alpha scaling here so the
    # kernel stays a pure partial-sum producer.
    total = total - jnp.float32(m_pad - M)
    return jnp.float32(alpha) * jnp.sqrt(jnp.maximum(total, jnp.float32(0.0)))


if __name__ == "__main__":
    key = jax.random.PRNGKey(0)
    alpha = 0.1
    k1, k2, k3, k4 = jax.random.split(key, 4)

    def ref_loss(W, a):
        Wf = W.astype(jnp.float32)
        return a * jnp.linalg.norm(Wf @ Wf.T - jnp.eye(W.shape[0], dtype=jnp.float32))

    # 1) Small MO-coefficient-like matrix: single-block, single-K slab path.
    W1 = jax.random.normal(k1, (32, 256), dtype=jnp.float32) * 0.1
    l1 = jax.block_until_ready(ortho_reg(W1, alpha=alpha))
    assert jnp.allclose(l1, ref_loss(W1, alpha), rtol=1e-4, atol=1e-5), (l1, ref_loss(W1, alpha))

    # 2) Non-aligned shape + forced small tiles: multi-block slab schedule with
    #    K accumulation, M/N zero padding and off-diagonal doubling.
    W2 = jax.random.normal(k2, (72, 192), dtype=jnp.float32) * 0.1
    l2 = jax.block_until_ready(ortho_reg(W2, alpha=alpha, tm=32, tk=128, schedule="slab"))
    assert jnp.allclose(l2, ref_loss(W2, alpha), rtol=1e-4, atol=1e-5), (l2, ref_loss(W2, alpha))

    # 3) Block-pair fallback path (used when the Gram triangle exceeds VMEM):
    #    blocked per-pair output, megacore-safe "parallel" pair axis.
    W3 = jax.random.normal(k3, (96, 320), dtype=jnp.float32) * 0.1
    l3 = jax.block_until_ready(ortho_reg(W3, alpha=alpha, tm=32, tk=128, schedule="pairs"))
    assert jnp.allclose(l3, ref_loss(W3, alpha), rtol=1e-4, atol=1e-5), (l3, ref_loss(W3, alpha))

    # 4) bf16 weights: dtype-aware sublane alignment (tm multiple of 16),
    #    bf16 MXU feed with f32 accumulation.
    W4 = (jax.random.normal(k4, (40, 256), dtype=jnp.float32) * 0.1).astype(jnp.bfloat16)
    l4 = jax.block_until_ready(ortho_reg(W4, alpha=alpha))
    assert jnp.allclose(l4, ref_loss(W4, alpha), rtol=2e-2, atol=1e-3), (l4, ref_loss(W4, alpha))

    print("KERNEL_OK")
</pallas_src>

<mosaic_0001>
module attributes {stable_mosaic.version = 11 : i64} {
  func.func @_ortho_slab_kernel(%arg0: i32, %arg1: memref<32x256xf32, #tpu.memory_space<vmem>>, %arg2: memref<1xf32, #tpu.memory_space<smem>>, %arg3: memref<1x32x32xf32, #tpu.memory_space<vmem>>) attributes {dimension_semantics = [#tpu.dimension_semantics<arbitrary>], iteration_bounds = array<i64: 1>, scalar_prefetch = 0 : i64, scratch_operands = 1 : i64, tpu.core_type = #tpu.core_type<tc>, window_params = [{transform_indices = @transform_0, window_bounds = array<i64: 32, 256>}, {transform_indices = @transform_1, window_bounds = array<i64: 1>}]} {
    %c0 = arith.constant 0 : index
    %c0_0 = arith.constant 0 : index
    %0 = vector.load %arg1[%c0, %c0_0] : memref<32x256xf32, #tpu.memory_space<vmem>>, vector<32x256xf32>
    %cst = arith.constant dense<0.000000e+00> : vector<32x32xf32>
    %1 = tpu.matmul %0, %0, %cst {dimension_numbers = #tpu.dot_dimension_numbers<[1], [1], [0], [0], [0, 0, 1, 0], [], []>} : vector<32x256xf32>, vector<32x256xf32>, vector<32x32xf32> -> vector<32x32xf32>
    %c0_1 = arith.constant 0 : index
    %c0_2 = arith.constant 0 : index
    %c0_3 = arith.constant 0 : index
    %2 = vector.load %arg3[%c0_1, %c0_2, %c0_3] : memref<1x32x32xf32, #tpu.memory_space<vmem>>, vector<1x32x32xf32>
    %3 = vector.shape_cast %2 : vector<1x32x32xf32> to vector<32x32xf32>
    %4 = vector.shape_cast %1 : vector<32x32xf32> to vector<1x32x32xf32>
    tpu.vector_store %arg3[%c0_1, %c0_2, %c0_3], %4 {strides = array<i32>} : memref<1x32x32xf32, #tpu.memory_space<vmem>>, vector<1x32x32xf32>,
    %c0_i32 = arith.constant 0 : i32
    %5 = arith.cmpi eq, %arg0, %c0_i32 : i32
    %6 = arith.extui %5 : i1 to i32
    %c0_i32_4 = arith.constant 0 : i32
    %7 = arith.cmpi ne, %6, %c0_i32_4 : i32
    scf.if %7 {
      %c0_5 = arith.constant 0 : index
      %c0_6 = arith.constant 0 : index
      %c0_7 = arith.constant 0 : index
      %8 = vector.load %arg3[%c0_5, %c0_6, %c0_7] : memref<1x32x32xf32, #tpu.memory_space<vmem>>, vector<1x32x32xf32>
      %9 = vector.shape_cast %8 : vector<1x32x32xf32> to vector<32x32xf32>
      %10 = arith.mulf %9, %9 : vector<32x32xf32>
      %11 = vector.shape_cast %10 : vector<32x32xf32> to vector<1x32x32xf32>
      %cst_8 = arith.constant dense<0.000000e+00> : vector<1xf32>
      %12 = vector.multi_reduction <add>, %11, %cst_8 [1, 2] : vector<1x32x32xf32> to vector<1xf32>
      %13 = vector.shape_cast %12 : vector<1xf32> to vector<1x1x1xf32>
      %14 = vector.extract %13[0, 0, 0] : f32 from vector<1x1x1xf32>
      %15 = tpu.iota {dimensions = array<i32: 0>} : vector<32x32xi32>
      %16 = tpu.iota {dimensions = array<i32: 1>} : vector<32x32xi32>
      %17 = arith.cmpi eq, %15, %16 : vector<32x32xi32>
      %cst_9 = arith.constant 0.000000e+00 : f32
      %18 = vector.broadcast %cst_9 : f32 to vector<32x32xf32>
      %19 = arith.select %17, %9, %18 : vector<32x32xi1>, vector<32x32xf32>
      %20 = vector.shape_cast %19 : vector<32x32xf32> to vector<1x32x32xf32>
      %cst_10 = arith.constant dense<0.000000e+00> : vector<1xf32>
      %21 = vector.multi_reduction <add>, %20, %cst_10 [1, 2] : vector<1x32x32xf32> to vector<1xf32>
      %22 = vector.shape_cast %21 : vector<1xf32> to vector<1x1x1xf32>
      %23 = vector.extract %22[0, 0, 0] : f32 from vector<1x1x1xf32>
      %cst_11 = arith.constant 2.000000e+00 : f32
      %24 = arith.mulf %cst_11, %23 : f32
      %25 = arith.subf %14, %24 : f32
      %cst_12 = arith.constant 3.200000e+01 : f32
      %26 = arith.addf %25, %cst_12 : f32
      %cst_13 = arith.constant 0.000000e+00 : f32
      %27 = arith.addf %cst_13, %26 : f32
      %c0_14 = arith.constant 0 : index
      %28 = memref.load %arg2[%c0_14] : memref<1xf32, #tpu.memory_space<smem>>
      memref.store %27, %arg2[%c0_14] : memref<1xf32, #tpu.memory_space<smem>>
    } else {
    }
    return
  }
  func.func @transform_0(%arg0: i32) -> (i32, i32) {
    %c0_i32 = arith.constant 0 : i32
    %c0_i32_0 = arith.constant 0 : i32
    return %c0_i32, %arg0 : i32, i32
  }
  func.func @transform_1(%arg0: i32) -> i32 {
    %c0_i32 = arith.constant 0 : i32
    %c0_i32_0 = arith.constant 0 : i32
    return %c0_i32 : i32
  }
}

</mosaic_0001>

<bundles_post_ra>
// kernel: tpu_custom_call.1
= control target key start
LH: loop header
LB: loop body
LE: loop exit
PB: predicated region body
PF: predicated region fallthrough
CT: control target
= control target key end

     0   :  { %6 = vsyncpa [#allocation4], 0  ;;  %s265_s0 = inlined_call_operand.hbm [shape: f32[32,256], index: 0, kind: input, shape index: {}]   ;;  %s266_s1 = inlined_call_operand.hbm [shape: f32[1], index: 1, kind: output, shape index: {}]  }
   0x1   :  { %7 = vsyncpa [#allocation5], 0  ;;  %s12_s8 = sshll.u32 %s265_s0, 4  ;;  %s233_s9 = smov [#allocation3]   ;;  %s13_s8 = int_to_ptr.hbm [resolvable:$true] %s12_s8 }
   0x2   :  { %s14_s10 = sshll.u32 %s233_s9, 4  ;;  %s234_s11 = smov 256   ;;  %s15_s10 = int_to_ptr.vmem [resolvable:$true] %s14_s10 }
   0x3   :  { %s235_s12 = smov 16  }
   0x4   :  { %20 = dma.hbm_to_vmem [thread:$0]  %s13_s8, 1024, %s15_s10, [#allocation4], %s234_s11, %s234_s11, %s235_s12  }
   0x5   :  { %229 = dma.done.wait [#allocation4], 1024  }
   0x6   :  { %230 = vsyncadd [#allocation4], 4294966272  ;;  %v31_v0 = vld [vmem:[#allocation3 + $0x30] sm:$0xff]  ;;  %v32_v1 = vld [vmem:[#allocation3 + $0x38] sm:$0xff]  ;;  %vm91_vm0 = vcmask 261120   ;;  %v124_v17 = vlaneseq  ;;  %s166_s17 = sshll.u32 %s266_s1, 4  ;;  %s167_s17 = int_to_ptr.hbm [resolvable:$true] %s166_s17 }
   0x7   :  { %45 = vmatpush.xpose.msra.mxu0 %v31_v0  ;;  %177 = vmatpush.xpose.msra.mxu2 %v31_v0  ;;  %v29_v2 = vld [vmem:[#allocation3 + $0x20] sm:$0xff]  ;;  %v30_v3 = vld [vmem:[#allocation3 + $0x28] sm:$0xff]  ;;  %v27_v4 = vld [vmem:[#allocation3 + $0x10] sm:$0xff]  ;;  %s236_s20 = smov [#allocation6]  }
   0x8   :  { %74 = vmatpush.xpose.msra.mxu1 %v32_v1  ;;  %181 = vmatpush.xpose.msra.mxu3 %v32_v1  ;;  %v28_v5 = vld [vmem:[#allocation3 + $0x18] sm:$0xff]  ;;  %v25_v6 = vld [vmem:[#allocation3] sm:$0xff]  ;;  %v26_v7 = vld [vmem:[#allocation3 + $0x8] sm:$0xff]  ;;  %v125_v22 = vshrl.u32 %v124_v17, 7  ;;  %v130_v28 = vand.u32 127, %v124_v17 }
   0xa   :  { %v126_v24 = vadd.s32 8, %v125_v22  ;;  %v127_v33 = vadd.s32 16, %v125_v22  ;;  %v128_v34 = vadd.s32 24, %v125_v22  ;;  %vm131_vm2 = vcmp.eq.s32.totalorder %v125_v22, %v130_v28 }
   0xb   :  { %46 = vmatpush.xpose.msra.mxu0 %v29_v2  ;;  %178 = vmatpush.xpose.msra.mxu2 %v29_v2 }
   0xc   :  { %75 = vmatpush.xpose.msra.mxu1 %v30_v3  ;;  %182 = vmatpush.xpose.msra.mxu3 %v30_v3  ;;  %vm132_vm1 = vcmp.eq.s32.totalorder %v126_v24, %v130_v28  ;;  %vm133_vm3 = vcmp.eq.s32.totalorder %v127_v33, %v130_v28  ;;  %vm134_vm4 = vcmp.eq.s32.totalorder %v128_v34, %v130_v28 }
   0xf   :  { %47 = vmatpush.xpose.msra.mxu0 %v27_v4  ;;  %179 = vmatpush.xpose.msra.mxu2 %v27_v4 }
  0x10   :  { %76 = vmatpush.xpose.msra.mxu1 %v28_v5  ;;  %183 = vmatpush.xpose.msra.mxu3 %v28_v5 }
  0x13   :  { %48 = vmatpush.xpose.msra.mxu0 %v25_v6  ;;  %180 = vmatpush.xpose.msra.mxu2 %v25_v6 }
  0x14   :  { %77 = vmatpush.xpose.msra.mxu1 %v26_v7  ;;  %184 = vmatpush.xpose.msra.mxu3 %v26_v7 }
  0x16   :  { %49 = vmatmul.f32.vlgmr.msra.gmra.mxu0 %v25_v6  ;;  %55 = vmatmul.f32.vlgmr.msra.gmra.mxu2 %v29_v2 }
  0x17   :  { %78 = vmatmul.f32.vlgmr.msra.gmra.mxu1 %v26_v7  ;;  %84 = vmatmul.f32.vlgmr.msra.gmra.mxu3 %v30_v3 }
  0x1e   :  { %52 = vmatmul.f32.gmra.mxu0 %v27_v4  ;;  %58 = vmatmul.f32.gmra.mxu2 %v31_v0 }
  0x1f   :  { %81 = vmatmul.f32.gmra.mxu1 %v28_v5  ;;  %87 = vmatmul.f32.gmra.mxu3 %v32_v1 }
  0x93   :  { %v50_v8 = vpop.f32.mrf.mxu0 }
  0x94   :  { %v79_v9 = vpop.f32.mrf.mxu1 }
  0x95   :  { %v80_v10 = vadd.f32 %v79_v9, %v50_v8 }
  0x97   :  { %92 = vst.msk [vmem:[#allocation2] sm:$0xff] %vm91_vm0, %v80_v10 }
  0x99   :  { %v56_v11 = vpop.f32.mrf.mxu2 }
  0x9a   :  { %v85_v12 = vpop.f32.mrf.mxu3 }
  0x9b   :  { %v86_v13 = vadd.f32 %v85_v12, %v56_v11  ;;  %v53_v14 = vpop.f32.mrf.mxu0 }
  0x9c   :  { %v82_v15 = vpop.f32.mrf.mxu1 }
  0x9d   :  { %94 = vst.msk [vmem:[#allocation2 + $0x10] sm:$0xff] %vm91_vm0, %v86_v13  ;;  %v83_v16 = vadd.f32 %v82_v15, %v53_v14 }
  0x9e   :  { %v100_v20 = vld [vmem:[#allocation2] sm:$0xff] }
  0x9f   :  { %93 = vst.msk [vmem:[#allocation2 + $0x8] sm:$0xff] %vm91_vm0, %v83_v16  ;;  %v104_v23 = vmul.f32 %v100_v20, %v100_v20  ;;  %v135_v40 = vsel %vm131_vm2, %v100_v20, 0.0 }
  0xa0   :  { %v139_v44 = vsel %vm91_vm0, %v135_v40, 0.0 }
  0xa1   :  { %v59_v18 = vpop.f32.mrf.mxu2  ;;  %v108_v30 = vsel %vm91_vm0, %v104_v23, 0.0 }
  0xa2   :  { %v88_v19 = vpop.f32.mrf.mxu3 }
  0xa3   :  { %v89_v21 = vadd.f32 %v88_v19, %v59_v18 }
  0xa4   :  { %v102_v26 = vld [vmem:[#allocation2 + $0x10] sm:$0xff] }
  0xa5   :  { %95 = vst.msk [vmem:[#allocation2 + $0x18] sm:$0xff] %vm91_vm0, %v89_v21  ;;  %v106_v29 = vmul.f32 %v102_v26, %v102_v26  ;;  %v137_v45 = vsel %vm133_vm3, %v102_v26, 0.0 }
  0xa6   :  { %v101_v25 = vld [vmem:[#allocation2 + $0x8] sm:$0xff]  ;;  %v142_v48 = vsel %vm91_vm0, %v137_v45, 0.0 }
  0xa7   :  { %v105_v27 = vmul.f32 %v101_v25, %v101_v25  ;;  %v136_v36 = vsel %vm132_vm1, %v101_v25, 0.0  ;;  %v111_v38 = vsel %vm91_vm0, %v106_v29, 0.0 }
  0xa8   :  { %v140_v42 = vsel %vm91_vm0, %v136_v36, 0.0 }
  0xa9   :  { %v109_v31 = vsel %vm91_vm0, %v105_v27, 0.0  ;;  %v141_v47 = vadd.f32 %v140_v42, %v139_v44 }
  0xaa   :  { %v110_v32 = vadd.f32 %v109_v31, %v108_v30 }
  0xab   :  { %v143_v50 = vadd.f32 %v142_v48, %v141_v47 }
  0xac   :  { %v103_v35 = vld [vmem:[#allocation2 + $0x18] sm:$0xff]  ;;  %v112_v39 = vadd.f32 %v111_v38, %v110_v32 }
  0xad   :  { %v107_v37 = vmul.f32 %v103_v35, %v103_v35  ;;  %v138_v46 = vsel %vm134_vm4, %v103_v35, 0.0 }
  0xae   :  { %v144_v49 = vsel %vm91_vm0, %v138_v46, 0.0 }
  0xaf   :  { %v113_v41 = vsel %vm91_vm0, %v107_v37, 0.0  ;;  %v145_v51 = vadd.f32 %v144_v49, %v143_v50 }
  0xb0   :  { %v114_v43 = vadd.f32 %v113_v41, %v112_v39 }
  0xb2   :  { %115 = vadd.xlane.f32.xlu0 %v114_v43 }
  0xba   :  { %146 = vadd.xlane.f32.xlu0 %v145_v51 }
 0x125   :  { %v116_v52 = vpop.xlane.xlu0 %115 }
 0x126   :  { %v117_v53 = vrot.slane %v116_v52, 4 }
 0x128   :  { %v118_v54 = vadd.f32 %v117_v53, %v116_v52 }
 0x12a   :  { %v119_v55 = vrot.slane %v118_v54, 2 }
 0x12c   :  { %v120_v56 = vadd.f32 %v119_v55, %v118_v54 }
 0x12d   :  { %v147_v57 = vpop.xlane.xlu0 %146 }
 0x12e   :  { %v148_v58 = vrot.slane %v147_v57, 4  ;;  %v121_v59 = vrot.slane %v120_v56, 1 }
 0x130   :  { %v149_v60 = vadd.f32 %v148_v58, %v147_v57  ;;  %v122_v61 = vadd.f32 %v121_v59, %v120_v56 }
 0x132   :  { %v150_v62 = vrot.slane %v149_v60, 2  ;;  %185 = vpush %v122_v61 }
 0x134   :  { %v151_v63 = vadd.f32 %v150_v62, %v149_v60 }
 0x136   :  { %v152_v0 = vrot.slane %v151_v63, 1 }
 0x138   :  { %v153_v1 = vadd.f32 %v152_v0, %v151_v63 }
 0x13a   :  { %187 = vpush %v153_v1 }
 0x163   :  { %s186_s0 = spop %185 }
 0x16b   :  { %s188_s13 = spop %187 }
 0x16c   :  { %s155_s14 = smul.f32 2.0, %s188_s13 }
 0x16e   :  { %s156_s18 = ssub.f32 %s186_s0, %s155_s14 }
 0x170   :  { %s157_s19 = sadd.f32 32.0, %s156_s18 }
 0x172   :  { %160 = sst [smem:[#allocation6]] %s157_s19 }
 0x173   :  { %169 = dma.smem_to_hbm %s236_s20, 16, %s167_s17, [#allocation5]  }
 0x174   :  { %231 = dma.done.wait [#allocation5], 16  }
 0x175   :  { %232 = vsyncadd [#allocation5], 4294967280 }
 0x176   :  { %174 = sfence }
 0x177   :  { %175 = vsyncpa [#allocation4], 1 }
 0x178   :  { %176 = vsyncpa [#allocation5], 1 }

</bundles_post_ra>
